<compile_context>
chip_gen: v7x
topology: tpu7x:2x2x1
jax: 0.10.0
libtpu: 0.0.40
codegen_flags: <defaults>
</compile_context>

<pallas_src>
import math
import functools

import jax
import jax.numpy as jnp
from jax import lax
from jax.experimental import pallas as pl
from jax.experimental.pallas import tpu as pltpu


_NEG_CLAMP = -1e30                 # keeps exp() finite for fully-masked rows
_VMEM_LIMIT = 32 * 1024 * 1024     # explicit scoped-VMEM budget (safe on v5e..v7x)


def _pick_tile(n, target):
    """Largest divisor of n that is <= target and a multiple of 8, else n."""
    if n <= target:
        return n
    for t in range(min(target, n), 0, -1):
        if n % t == 0 and t % 8 == 0:
            return t
    return n


def _pick_lane_tile(n, target):
    """Like _pick_tile but the tile lands in the lane dim -> multiple of 128."""
    if n <= target:
        return n
    for t in range(min(target, n), 0, -1):
        if n % t == 0 and t % 128 == 0:
            return t
    return n
# TODO(synk): replace the "fall back to the whole axis" behavior with pl.cdiv
# grids + in-kernel length masking so awkward sequence lengths never force a
# full-axis tile (VMEM hazard on v7x's 64 MiB).


# ----------------------------------------------------------------------------
# Kernel 1: (batched) dense / linear layer  y = x @ W + b, row- and col-tiled
# ----------------------------------------------------------------------------
def _linear_kernel(x_ref, w_ref, b_ref, o_ref):
    # x_ref: (1, TM, Din), w_ref: (1, Din, TN), b_ref: (1, 1, TN)
    acc = lax.dot_general(x_ref[0], w_ref[0], (((1,), (0,)), ((), ())),
                          preferred_element_type=jnp.float32)
    o_ref[0] = (acc + b_ref[0].astype(jnp.float32)).astype(o_ref.dtype)


def linear_pallas(x, w, b, row_block=256, col_block=512):
    """y = x @ w + b.

    x: (N, Din) or (P, N, Din); w: (Din, Dout) or (P, Din, Dout);
    b: (Dout,) or (P, Dout).  Returns (N, Dout) or (P, N, Dout).

    Grid is (P, col_tiles, row_tiles): the (Din, tn) weight block is constant
    across the innermost row axis (held in VMEM) while activations stream.
    """
    squeeze = x.ndim == 2
    if squeeze:
        x, w = x[None], w[None]
    P, N, Din = x.shape
    Dout = w.shape[-1]
    b3 = jnp.reshape(b, (P, 1, Dout)).astype(x.dtype)
    tm = _pick_tile(N, row_block)
    tn = _pick_lane_tile(Dout, col_block)
    # TODO(synk): for very large Din add a reduction grid axis with an f32
    # accumulator scratch instead of keeping the full Din in one weight block.

    out = pl.pallas_call(
        _linear_kernel,
        out_shape=jax.ShapeDtypeStruct((P, N, Dout), x.dtype),
        grid=(P, Dout // tn, N // tm),
        in_specs=[
            pl.BlockSpec((1, tm, Din), lambda p, j, i: (p, i, 0)),
            pl.BlockSpec((1, Din, tn), lambda p, j, i: (p, 0, j)),
            pl.BlockSpec((1, 1, tn), lambda p, j, i: (p, 0, j)),
        ],
        out_specs=pl.BlockSpec((1, tm, tn), lambda p, j, i: (p, i, j)),
        compiler_params=pltpu.CompilerParams(
            dimension_semantics=("parallel", "parallel", "parallel"),
            vmem_limit_bytes=_VMEM_LIMIT),
    )(x, w, b3)
    return out[0] if squeeze else out


# ----------------------------------------------------------------------------
# Kernel 2: flash-style multi-head attention, (B, S, D) lane-dense layout,
#           optional additive mask and optional fused output projection.
# ----------------------------------------------------------------------------
def _flash_attn_kernel(*refs, num_heads, head_dim, has_mask, fuse_out):
    i = 0
    q_ref = refs[i]; i += 1
    k_ref = refs[i]; i += 1
    v_ref = refs[i]; i += 1
    mask_ref = None
    if has_mask:
        mask_ref = refs[i]; i += 1
    wo_ref = bo_ref = None
    if fuse_out:
        wo_ref, bo_ref = refs[i], refs[i + 1]; i += 2
    o_ref = refs[i]; i += 1
    m_sc, l_sc, acc_sc = refs[i], refs[i + 1], refs[i + 2]

    kv_i = pl.program_id(2)
    n_kv = pl.num_programs(2)

    @pl.when(kv_i == 0)
    def _():
        m_sc[...] = jnp.full(m_sc.shape, -jnp.inf, m_sc.dtype)
        l_sc[...] = jnp.zeros(l_sc.shape, l_sc.dtype)
        acc_sc[...] = jnp.zeros(acc_sc.shape, acc_sc.dtype)

    mask_tile = None
    if mask_ref is not None:
        mask_tile = mask_ref[0].astype(jnp.float32)          # (TQ, TKV)

    # TODO(synk): for head_dim < 128 on the 256-wide MXU parts (v6e/v7x), pull
    # 128-lane-aligned slices covering several heads at once to avoid per-head
    # vreg relayouts and MXU underutilization; prefer head_dim=128 models.
    # TODO(synk): add causal block-skipping (pl.when on the kv tile index) once
    # the module exposes an is_causal flag instead of an opaque additive mask.
    for h in range(num_heads):
        hs = slice(h * head_dim, (h + 1) * head_dim)
        q_h = q_ref[0, :, hs]          # (TQ, hd); 1/sqrt(hd) folded into weights
        k_h = k_ref[0, :, hs]          # (TKV, hd)
        v_h = v_ref[0, :, hs]          # (TKV, hd)

        # q_h @ k_h^T without an explicit transpose: contract the hd axes.
        s = lax.dot_general(q_h, k_h, (((1,), (1,)), ((), ())),
                            preferred_element_type=jnp.float32)   # (TQ, TKV)
        if mask_tile is not None:
            s = s + mask_tile

        m_prev = m_sc[h]                                          # (TQ, 1)
        l_prev = l_sc[h]
        m_new = jnp.maximum(m_prev, jnp.max(s, axis=-1, keepdims=True))
        m_new = jnp.maximum(m_new, _NEG_CLAMP)                    # masked-row guard
        alpha = jnp.exp(m_prev - m_new)
        p = jnp.exp(s - m_new)
        l_sc[h] = alpha * l_prev + jnp.sum(p, axis=-1, keepdims=True)
        pv = lax.dot_general(p.astype(v_h.dtype), v_h, (((1,), (0,)), ((), ())),
                             preferred_element_type=jnp.float32)  # (TQ, hd)
        acc_sc[h] = alpha * acc_sc[h] + pv
        m_sc[h] = m_new

    @pl.when(kv_i == n_kv - 1)
    def _():
        outs = []
        for h in range(num_heads):
            l_h = l_sc[h]
            inv = pl.reciprocal(l_h, approx=True)                 # EUP vrcp
            inv = inv * (2.0 - l_h * inv)                         # one Newton step
            outs.append(acc_sc[h] * inv)
        attn = jnp.concatenate(outs, axis=-1)                     # (TQ, D) f32
        if fuse_out:
            proj = lax.dot_general(attn.astype(wo_ref.dtype), wo_ref[...],
                                   (((1,), (0,)), ((), ())),
                                   preferred_element_type=jnp.float32)
            o_ref[0] = (proj + bo_ref[...].astype(jnp.float32)).astype(o_ref.dtype)
        else:
            o_ref[0] = attn.astype(o_ref.dtype)                   # lane-dense store


def attention_pallas(q3, k3, v3, mask3, num_heads, head_dim, *, d_model,
                     d_blocks=(0, 0, 0), wo=None, bo=None,
                     q_block=256, kv_block=256):
    """q3/k3/v3: (B, S, D) -- or the SAME packed (B, S, 3D) array passed three
    times with d_blocks=(0,1,2) selecting the q/k/v thirds of the last dim.
    mask3: None or additive mask of shape (1-or-B, Sq, Skv)."""
    B, Sq = q3.shape[0], q3.shape[1]
    Skv = k3.shape[1]
    D = d_model
    tq = _pick_tile(Sq, q_block)
    tkv = _pick_lane_tile(Skv, kv_block)      # lane-aligned score/PV width

    qb, kb, vb = d_blocks
    in_specs = [
        pl.BlockSpec((1, tq, D), lambda b, qi, ki, _j=qb: (b, qi, _j)),
        pl.BlockSpec((1, tkv, D), lambda b, qi, ki, _j=kb: (b, ki, _j)),
        pl.BlockSpec((1, tkv, D), lambda b, qi, ki, _j=vb: (b, ki, _j)),
    ]
    inputs = [q3, k3, v3]

    has_mask = mask3 is not None
    if has_mask:
        # Batch-broadcast via index_map; never materialize (B, Sq, Skv) in HBM.
        per_batch = mask3.shape[0] != 1
        in_specs.append(pl.BlockSpec(
            (1, tq, tkv),
            lambda b, qi, ki, _pb=per_batch: (b if _pb else 0, qi, ki)))
        inputs.append(mask3)

    fuse_out = wo is not None
    if fuse_out:
        in_specs.append(pl.BlockSpec((D, D), lambda b, qi, ki: (0, 0)))
        in_specs.append(pl.BlockSpec((1, D), lambda b, qi, ki: (0, 0)))
        inputs.extend([wo, jnp.reshape(bo, (1, D)).astype(wo.dtype)])

    kernel = functools.partial(_flash_attn_kernel, num_heads=num_heads,
                               head_dim=head_dim, has_mask=has_mask,
                               fuse_out=fuse_out)

    return pl.pallas_call(
        kernel,
        out_shape=jax.ShapeDtypeStruct((B, Sq, D), q3.dtype),
        grid=(B, Sq // tq, Skv // tkv),
        in_specs=in_specs,
        out_specs=pl.BlockSpec((1, tq, D), lambda b, qi, ki: (b, qi, 0)),
        scratch_shapes=[
            pltpu.VMEM((num_heads, tq, 1), jnp.float32),          # running max
            pltpu.VMEM((num_heads, tq, 1), jnp.float32),          # running sum
            pltpu.VMEM((num_heads, tq, head_dim), jnp.float32),   # f32 accumulator
        ],
        compiler_params=pltpu.CompilerParams(
            dimension_semantics=("parallel", "parallel", "arbitrary"),
            vmem_limit_bytes=_VMEM_LIMIT),
    )(*inputs)


# ----------------------------------------------------------------------------
# Module wrapper (parameter setup + cheap reshapes in plain JAX)
# ----------------------------------------------------------------------------
class MultiheadAttentionPallas:
    def __init__(self, d_model, num_heads, rng_key, dtype=jnp.float32,
                 q_block=256, kv_block=256, row_block=256, col_block=512,
                 fuse_out_proj=None):
        assert d_model % num_heads == 0, "d_model must be divisible by num_heads"
        self.d_model = d_model
        self.num_heads = num_heads
        self.head_dim = d_model // num_heads
        self.dtype = dtype
        self.q_block = q_block
        self.kv_block = kv_block
        self.row_block = row_block
        self.col_block = col_block

        # nn.Linear-style init: U(-1/sqrt(fan_in), 1/sqrt(fan_in)), deterministic.
        bound = 1.0 / math.sqrt(d_model)
        keys = jax.random.split(rng_key, 8)

        def mk_w(k):  # stored as (in, out) == W.T of the PyTorch (out, in) weight
            return jax.random.uniform(k, (d_model, d_model), jnp.float32, -bound, bound)

        def mk_b(k):
            return jax.random.uniform(k, (d_model,), jnp.float32, -bound, bound)

        wq, bq = mk_w(keys[0]), mk_b(keys[1])
        wk, bk = mk_w(keys[2]), mk_b(keys[3])
        wv, bv = mk_w(keys[4]), mk_b(keys[5])
        wo, bo = mk_w(keys[6]), mk_b(keys[7])

        # Unscaled params (PyTorch-equivalent; used by the pure-JAX reference).
        self.wq, self.bq = wq.astype(dtype), bq.astype(dtype)
        self.wk, self.bk = wk.astype(dtype), bk.astype(dtype)
        self.wv, self.bv = wv.astype(dtype), bv.astype(dtype)
        self.wo, self.bo = wo.astype(dtype), bo.astype(dtype)

        # Fold 1/sqrt(head_dim) into the q projection (zero-cost, host-side);
        # the kernel then never multiplies q by scale per head per kv step.
        scale = 1.0 / math.sqrt(self.head_dim)
        wq_s, bq_s = wq * scale, bq * scale
        self.wq_s, self.bq_s = wq_s.astype(dtype), bq_s.astype(dtype)

        # Fused QKV weight (self-attention: one activation pass) and stacked
        # form (distinct q/k/v inputs of equal shape: single pallas_call).
        self.w_qkv = jnp.concatenate([wq_s, wk, wv], axis=1).astype(dtype)   # (D, 3D)
        self.b_qkv = jnp.concatenate([bq_s, bk, bv]).astype(dtype)           # (3D,)
        self.w_stack = jnp.stack([wq_s, wk, wv]).astype(dtype)               # (3, D, D)
        self.b_stack = jnp.stack([bq_s, bk, bv]).astype(dtype)               # (3, D)

        if fuse_out_proj is None:
            # Auto: fuse the output projection into the attention epilogue while
            # wo's double-buffered VMEM footprint stays modest (v7x = 64 MiB).
            wo_bytes = 2 * d_model * d_model * jnp.dtype(dtype).itemsize
            fuse_out_proj = wo_bytes <= 8 * 1024 * 1024
        self.fuse_out_proj = fuse_out_proj

    def __call__(self, query, key, value, mask=None):
        B, Sq, D = query.shape
        Skv = key.shape[1]
        H, hd = self.num_heads, self.head_dim
        dt = self.dtype
        self_attn = (query is key) and (key is value)
        d_blocks = (0, 0, 0)

        if self_attn:
            x = query.astype(dt).reshape(B * Sq, D)
            qkv = linear_pallas(x, self.w_qkv, self.b_qkv,
                                self.row_block, self.col_block)      # (B*Sq, 3D)
            if D % 128 == 0:
                # No jnp.split: the packed activation goes straight to attention,
                # whose BlockSpecs slice the q/k/v thirds out of the last dim.
                q3 = k3 = v3 = qkv.reshape(B, Sq, 3 * D)
                d_blocks = (0, 1, 2)
            else:
                q3, k3, v3 = (t.reshape(B, Sq, D) for t in jnp.split(qkv, 3, axis=-1))
        elif key.shape == query.shape and value.shape == key.shape:
            xs = jnp.stack([query.astype(dt).reshape(B * Sq, D),
                            key.astype(dt).reshape(B * Sq, D),
                            value.astype(dt).reshape(B * Sq, D)])    # (3, B*S, D)
            qkv = linear_pallas(xs, self.w_stack, self.b_stack,
                                self.row_block, self.col_block)
            q3 = qkv[0].reshape(B, Sq, D)
            k3 = qkv[1].reshape(B, Skv, D)
            v3 = qkv[2].reshape(B, Skv, D)
        else:
            q3 = linear_pallas(query.astype(dt).reshape(B * Sq, D), self.wq_s,
                               self.bq_s, self.row_block, self.col_block
                               ).reshape(B, Sq, D)
            k3 = linear_pallas(key.astype(dt).reshape(B * Skv, D), self.wk,
                               self.bk, self.row_block, self.col_block
                               ).reshape(B, Skv, D)
            v3 = linear_pallas(value.astype(dt).reshape(B * Skv, D), self.wv,
                               self.bv, self.row_block, self.col_block
                               ).reshape(B, Skv, D)

        if mask is None:
            mask3 = None                  # mask-free kernel: no mask HBM traffic
        else:
            m = jnp.asarray(mask)
            if m.ndim == 2:               # (Sq, Skv) -> (1, Sq, Skv), batch-broadcast in-kernel
                m = m[None]
            elif m.ndim == 4:             # head-broadcast (B/1, 1, Sq/1, Skv)
                # TODO(synk): genuinely per-head additive masks (B, H, Sq, Skv)
                # are collapsed to head 0 here.
                m = m[:, 0]
            mask3 = m.astype(dt)          # (1-or-B, Sq, Skv); never broadcast to B in HBM

        wo = self.wo if self.fuse_out_proj else None
        bo = self.bo if self.fuse_out_proj else None
        out = attention_pallas(q3, k3, v3, mask3, H, hd, d_model=D,
                               d_blocks=d_blocks, wo=wo, bo=bo,
                               q_block=self.q_block, kv_block=self.kv_block)

        if not self.fuse_out_proj:
            out = linear_pallas(out.reshape(B * Sq, D), self.wo, self.bo,
                                self.row_block, self.col_block).reshape(B, Sq, D)
        return out


# ----------------------------------------------------------------------------
# Pure-JAX reference for correctness checks
# ----------------------------------------------------------------------------
def _reference_forward(mha, query, key, value, mask=None):
    B, Sq, D = query.shape
    Skv = key.shape[1]
    H, hd = mha.num_heads, mha.head_dim
    q = query @ mha.wq + mha.bq
    k = key @ mha.wk + mha.bk
    v = value @ mha.wv + mha.bv
    q = q.reshape(B, Sq, H, hd).transpose(0, 2, 1, 3)
    k = k.reshape(B, Skv, H, hd).transpose(0, 2, 1, 3)
    v = v.reshape(B, Skv, H, hd).transpose(0, 2, 1, 3)
    scores = jnp.einsum("bhqd,bhkd->bhqk", q, k) / math.sqrt(hd)
    if mask is not None:
        scores = scores + mask
    probs = jax.nn.softmax(scores, axis=-1)
    out = jnp.einsum("bhqk,bhkd->bhqd", probs, v)
    out = out.transpose(0, 2, 1, 3).reshape(B, Sq, D)
    return out @ mha.wo + mha.bo


if __name__ == "__main__":
    tol = dict(atol=2e-4, rtol=2e-4)
    root = jax.random.PRNGKey(0)
    k_param, k_q, k_k, k_v, k_x2, k_p2, k_x3 = jax.random.split(root, 7)

    # ---- small model: d_model=32, heads=4, batch=2, seq=8 -------------------
    d_model, num_heads, batch, seq = 32, 4, 2, 8
    mha = MultiheadAttentionPallas(d_model, num_heads, k_param)

    query = jax.random.normal(k_q, (batch, seq, d_model), jnp.float32)
    key = jax.random.normal(k_k, (batch, seq, d_model), jnp.float32)
    value = jax.random.normal(k_v, (batch, seq, d_model), jnp.float32)

    # 1) distinct q/k/v (single stacked-projection pallas_call), no mask
    out = jax.block_until_ready(mha(query, key, value, mask=None))
    ref = _reference_forward(mha, query, key, value, mask=None)
    assert out.shape == (batch, seq, d_model)
    assert jnp.allclose(out, ref, **tol), "cross-attn mismatch"

    # 2) self-attention (fused (D, 3D) QKV projection), no mask
    out_s = jax.block_until_ready(mha(query, query, query, mask=None))
    ref_s = _reference_forward(mha, query, query, query, mask=None)
    assert jnp.allclose(out_s, ref_s, **tol), "self-attn mismatch"

    # 3) additive (causal) mask path, streamed as (1, Sq, Skv)
    causal = jnp.where(jnp.arange(seq)[None, :] <= jnp.arange(seq)[:, None],
                       0.0, -1e9).astype(jnp.float32)
    out_m = jax.block_until_ready(mha(query, key, value, mask=causal))
    ref_m = _reference_forward(mha, query, key, value, mask=causal)
    assert jnp.allclose(out_m, ref_m, **tol), "masked mismatch"

    # 4) multi-tile flash path: longer sequence + small tiles so the online
    #    softmax accumulation across kv blocks (and row/col tiling) is exercised.
    mha_small = MultiheadAttentionPallas(d_model, num_heads, k_param,
                                         q_block=128, kv_block=128, row_block=64)
    seq2 = 256
    x2 = jax.random.normal(k_x2, (batch, seq2, d_model), jnp.float32)
    out_t = jax.block_until_ready(mha_small(x2, x2, x2, mask=None))
    ref_t = _reference_forward(mha_small, x2, x2, x2, mask=None)
    assert jnp.allclose(out_t, ref_t, **tol), "tiled flash mismatch"

    # 5) packed-QKV path (d_model % 128 == 0: no jnp.split after the fused
    #    projection) with a causal mask and the fused output projection.
    d_model2 = 128
    mha128 = MultiheadAttentionPallas(d_model2, num_heads, k_p2)
    x3 = jax.random.normal(k_x3, (batch, seq, d_model2), jnp.float32)
    causal2 = jnp.where(jnp.arange(seq)[None, :] <= jnp.arange(seq)[:, None],
                        0.0, -1e9).astype(jnp.float32)
    out_p = jax.block_until_ready(mha128(x3, x3, x3, mask=causal2))
    ref_p = _reference_forward(mha128, x3, x3, x3, mask=causal2)
    assert out_p.shape == (batch, seq, d_model2)
    assert jnp.allclose(out_p, ref_p, **tol), "packed-qkv mismatch"

    print("KERNEL_OK")
</pallas_src>

<mosaic_0001>
module attributes {stable_mosaic.version = 11 : i64} {
  func.func @_linear_kernel(%arg0: i32, %arg1: i32, %arg2: i32, %arg3: memref<1x16x32xf32, #tpu.memory_space<vmem>>, %arg4: memref<1x32x32xf32, #tpu.memory_space<vmem>>, %arg5: memref<1x1x32xf32, #tpu.memory_space<vmem>>, %arg6: memref<1x16x32xf32, #tpu.memory_space<vmem>>) attributes {dimension_semantics = [#tpu.dimension_semantics<parallel>, #tpu.dimension_semantics<parallel>, #tpu.dimension_semantics<parallel>], iteration_bounds = array<i64: 3, 1, 1>, scalar_prefetch = 0 : i64, scratch_operands = 0 : i64, tpu.core_type = #tpu.core_type<tc>, window_params = [{transform_indices = @transform_0, window_bounds = array<i64: 1, 16, 32>}, {transform_indices = @transform_1, window_bounds = array<i64: 1, 32, 32>}, {transform_indices = @transform_2, window_bounds = array<i64: 1, 1, 32>}, {transform_indices = @transform_3, window_bounds = array<i64: 1, 16, 32>}]} {
    %c0 = arith.constant 0 : index
    %c0_0 = arith.constant 0 : index
    %c0_1 = arith.constant 0 : index
    %0 = vector.load %arg3[%c0, %c0_0, %c0_1] : memref<1x16x32xf32, #tpu.memory_space<vmem>>, vector<1x16x32xf32>
    %1 = vector.shape_cast %0 : vector<1x16x32xf32> to vector<16x32xf32>
    %c0_2 = arith.constant 0 : index
    %c0_3 = arith.constant 0 : index
    %c0_4 = arith.constant 0 : index
    %2 = vector.load %arg4[%c0_2, %c0_3, %c0_4] : memref<1x32x32xf32, #tpu.memory_space<vmem>>, vector<1x32x32xf32>
    %3 = vector.shape_cast %2 : vector<1x32x32xf32> to vector<32x32xf32>
    %cst = arith.constant dense<0.000000e+00> : vector<16x32xf32>
    %4 = tpu.matmul %1, %3, %cst {dimension_numbers = #tpu.dot_dimension_numbers<[1], [0], [0], [1], [0, 0, 1, 1], [], []>} : vector<16x32xf32>, vector<32x32xf32>, vector<16x32xf32> -> vector<16x32xf32>
    %c0_5 = arith.constant 0 : index
    %c0_6 = arith.constant 0 : index
    %c0_7 = arith.constant 0 : index
    %5 = vector.load %arg5[%c0_5, %c0_6, %c0_7] : memref<1x1x32xf32, #tpu.memory_space<vmem>>, vector<1x1x32xf32>
    %6 = vector.shape_cast %5 : vector<1x1x32xf32> to vector<1x32xf32>
    %7 = vector.broadcast %6 : vector<1x32xf32> to vector<16x32xf32>
    %8 = arith.addf %4, %7 : vector<16x32xf32>
    %c0_8 = arith.constant 0 : index
    %c0_9 = arith.constant 0 : index
    %c0_10 = arith.constant 0 : index
    %9 = vector.load %arg6[%c0_8, %c0_9, %c0_10] : memref<1x16x32xf32, #tpu.memory_space<vmem>>, vector<1x16x32xf32>
    %10 = vector.shape_cast %9 : vector<1x16x32xf32> to vector<16x32xf32>
    %11 = vector.shape_cast %8 : vector<16x32xf32> to vector<1x16x32xf32>
    tpu.vector_store %arg6[%c0_8, %c0_9, %c0_10], %11 {strides = array<i32>} : memref<1x16x32xf32, #tpu.memory_space<vmem>>, vector<1x16x32xf32>,
    return
  }
  func.func @transform_0(%arg0: i32, %arg1: i32, %arg2: i32) -> (i32, i32, i32) {
    %c0_i32 = arith.constant 0 : i32
    %c0_i32_0 = arith.constant 0 : i32
    return %arg0, %arg2, %c0_i32 : i32, i32, i32
  }
  func.func @transform_1(%arg0: i32, %arg1: i32, %arg2: i32) -> (i32, i32, i32) {
    %c0_i32 = arith.constant 0 : i32
    %c0_i32_0 = arith.constant 0 : i32
    return %arg0, %c0_i32, %arg1 : i32, i32, i32
  }
  func.func @transform_2(%arg0: i32, %arg1: i32, %arg2: i32) -> (i32, i32, i32) {
    %c0_i32 = arith.constant 0 : i32
    %c0_i32_0 = arith.constant 0 : i32
    return %arg0, %c0_i32, %arg1 : i32, i32, i32
  }
  func.func @transform_3(%arg0: i32, %arg1: i32, %arg2: i32) -> (i32, i32, i32) {
    %c0_i32 = arith.constant 0 : i32
    return %arg0, %arg2, %arg1 : i32, i32, i32
  }
}

</mosaic_0001>

<bundles_post_ra>
// kernel: tpu_custom_call.1
= control target key start
LH: loop header
LB: loop body
LE: loop exit
PB: predicated region body
PF: predicated region fallthrough
CT: control target
= control target key end

     0   :  { %8 = vsyncpa [#allocation3], 0  ;;  %s1062_s0 = inlined_call_operand.hbm [shape: f32[3,16,32], index: 0, kind: input, shape index: {}]   ;;  %s1063_s1 = inlined_call_operand.hbm [shape: f32[3,32,32], index: 1, kind: input, shape index: {}]   ;;  %s1064_s2 = inlined_call_operand.vmem [shape: f32[3,1,32], index: 2, kind: input, shape index: {}]   ;;  %s1065_s3 = inlined_call_operand.hbm [shape: f32[3,16,32], index: 3, kind: output, shape index: {}]  }
   0x1   :  { %10 = vsyncpa [#allocation3 + $0x1], 0 }
   0x2   :  { %11 = vsyncpa [#allocation6], 0 }
   0x3   :  { %13 = vsyncpa [#allocation6 + $0x1], 0 }
   0x4   :  { %14 = vsyncpa [#allocation4], 0 }
   0x5   :  { %16 = vsyncpa [#allocation4 + $0x1], 0  ;;  %s824_s12 = smov 0   ;;  %s826_s13 = smov 0  }
   0x6   :  { %s828_s14 = smov 0   ;;  %s830_s15 = smov 0  }
   0x7   :  { %s832_s16 = smov 0   ;;  %s834_s17 = smov 0  }
   0x8 LB: > { %s528_s18 = sadd.s32 4294967295, %s795_s17   ;;  %s529_s19 = sadd.s32 4294967294, %s795_s17   ;;  %s795_s17 = sphi %s834_s17, %s22_s17   ;;  %s791_s16 = sphi %s832_s16, %s1082_s16   ;;  %s787_s15 = sphi %s830_s15, %s1081_s15   ;;  %s783_s14 = sphi %s828_s14, %s1080_s14   ;;  %s779_s13 = sphi %s826_s13, %s1079_s13   ;;  %s775_s12 = sphi %s824_s12, %s1078_s12  }
   0x9   : > { %s41_s20 = sadd.s32 1, %s791_s16  ;;  %s50_s21 = sadd.s32 1, %s783_s14 }
   0xa   : > { %p43_p0 = scmp.ge.s32.totalorder %s41_s20, 3  ;;  %p57_p1 = scmp.ne.s32.totalorder %s783_s14, %s779_s13 }
   0xb   : > { %p58_p2 = scmp.eq.s32.totalorder %s795_s17, 0  ;;  %p63_p3 = scmp.ne.s32.totalorder %s779_s13, %s775_s12 }
   0xc   : > { %s1084_s20 = smov (%p43_p0, %s41_s20), 0  ;;  %p64_p5 = scmp.eq.s32.totalorder %s528_s18, 0 }
   0xd   : > { %p865_p4 = por %p58_p2, %p57_p1  ;;  %s45_s23 = ssub.s32 %s791_s16, %s1084_s20 }
   0xe   : > { %p147_p6 = scmp.eq.s32.totalorder %s528_s18, 2  ;;  %p48_p7 = scmp.eq.s32.totalorder %s45_s23, 0 }
   0xf   : > { %p871_p8 = por %p64_p5, %p63_p3  ;;  %p153_p10 = scmp.eq.s32.totalorder %s529_s19, 2 }
  0x10   : > { %p875_p9 = por %p147_p6, %p57_p1  ;;  %p595_p12 = scmp.lt.s32.totalorder %s795_s17, 3 }
  0x11   : > { %s1069_s24 = scalar_select %p871_p8, 1, 0 }
  0x12   : > { %s1070_s25 = scalar_select %p875_p9, 1, 0 }
  0x13   : > { %s880_s26 = scalar_select %p48_p7, %s783_s14, %s50_s21  }
  0x14   : > { %p882_p11 = por %p153_p10, %p63_p3  ;;  %s888_s28 = sand.u32 1, %s783_s14  }
  0x15   : > { %s532_s29 = sshll.u32 %s888_s28, 4  ;;  %s550_s30 = sshll.u32 %s791_s16, 8 }
  0x16   : > { %s1071_s27 = scalar_select %p882_p11, 1, 0 }
  0x17   : > { %s895_s6 = scalar_lea.hbm %s1062_s0, %s550_s30  ;;  %s177_s7 = scalar_lea.vmem [#allocation2], %s532_s29 }
  0x18   : > { %s186_s8 = sshll.u32 %s177_s7, 4  ;;  %p901_p13 = pnand %p595_p12, %p865_p4  ;;  %s897_s8 = int_to_ptr.vmem [resolvable:$true] %s186_s8 }
  0x19   : > { %s174_s10 = scalar_lea.sflag [#allocation3], %s888_s28  ;;  %s649_s11 = scalar_lea.hbm %s895_s6, 256 }
  0x1a   : > { %p650_p1 = scmp.ne.s32.totalorder %s895_s6, %s649_s11  ;;  %p651_p2 = pneg %p901_p13 }
  0x1b   : > { %s654_s21 = scalar_lea.hbm %s1062_s0, 768  ;;  %p655_p4 = scmp.lt.u32.totalorder %s895_s6, %s1062_s0 }
  0x1c   : > { %p652_p3 = pnand %p651_p2, %p650_p1  ;;  %p656_p6 = scmp.lt.u32.totalorder %s654_s21, %s649_s11 }
  0x1d   : > { %p658_p10 = scmp.lt.u32.totalorder %s649_s11, %s895_s6 }
  0x1e   : > { %p653_p5 = pneg %p652_p3  ;;  %p657_p7 = por %p656_p6, %p655_p4 }
  0x20   : > { %p659_p12 = por %p658_p10, %p657_p7 }
  0x22   : > { %p660_p0 = pnand %p659_p12, %p653_p5 }
  0x24   : > { %663 = shalt.err (!%p660_p0)
}
  0x25   : > { %s664_s29 = scalar_lea.vmem %s897_s8, 256  ;;  %s797_s30 = smov [#allocation2]  }
  0x26   : > { %p665_p1 = scmp.ne.s32.totalorder %s897_s8, %s664_s29  ;;  %s669_s4 = sshll.u32 %s797_s30, 4  ;;  %s670_s4 = int_to_ptr.vmem [resolvable:$false] %s669_s4 }
  0x27   : > { %s671_s5 = scalar_lea.vmem %s670_s4, 512  ;;  %p672_p9 = scmp.lt.s32.totalorder %s897_s8, %s670_s4 }
  0x28   : > { %p667_p3 = pnand %p665_p1, %p651_p2  ;;  %p673_p4 = scmp.lt.s32.totalorder %s671_s5, %s664_s29 }
  0x2a   : > { %p668_p11 = pneg %p667_p3  ;;  %p674_p6 = por %p673_p4, %p672_p9 }
  0x2c   : > { %p675_p7 = pnand %p674_p6, %p668_p11 }
  0x2e   : > { %678 = shalt.err (!%p675_p7)
}
  0x2f   : > { %s798_s7 = smov 128   ;;  %s799_s11 = smov 8  }
  0x30   : > { %587 = dma.hbm_to_vmem [thread:$0]  (!%p901_p13), %s895_s6, 256, %s897_s8, %s174_s10, %s798_s7, %s798_s7, %s799_s11  }
  0x31   : > { %p225_p9 = scmp.lt.s32.totalorder %s795_s17, 4  ;;  %s535_s18 = sshll.u32 %s888_s28, 5 }
  0x32   : > { %s551_s19 = sshll.u32 %s791_s16, 9  ;;  %p1073_p11 = scmp.ge.s32.totalorder %s795_s17, 1 }
  0x33   : > { %s949_s29 = scalar_lea.hbm %s1063_s1, %s551_s19  ;;  %s200_s30 = scalar_lea.vmem [#allocation5], %s535_s18 }
  0x34   : > { %p942_p0 = pnand %p1073_p11, %p225_p9  ;;  %s208_s4 = sshll.u32 %s200_s30, 4  ;;  %s951_s4 = int_to_ptr.vmem [resolvable:$true] %s208_s4 }
  0x35   : > { %s197_s6 = scalar_lea.sflag [#allocation6], %s888_s28  ;;  %s679_s8 = scalar_lea.hbm %s949_s29, 512 }
  0x36   : > { %p680_p5 = scmp.ne.s32.totalorder %s949_s29, %s679_s8  ;;  %s684_s19 = scalar_lea.hbm %s1063_s1, 1536 }
  0x37   : > { %p685_p1 = scmp.lt.u32.totalorder %s949_s29, %s1063_s1  ;;  %p686_p3 = scmp.lt.u32.totalorder %s684_s19, %s679_s8 }
  0x38   : > { %p682_p10 = pnand %p680_p5, %p651_p2  ;;  %p688_p6 = scmp.lt.u32.totalorder %s679_s8, %s949_s29 }
  0x39   : > { %p687_p4 = por %p686_p3, %p685_p1 }
  0x3a   : > { %p683_p12 = pneg %p682_p10 }
  0x3b   : > { %p689_p7 = por %p688_p6, %p687_p4 }
  0x3d   : > { %p690_p9 = pnand %p689_p7, %p683_p12 }
  0x3f   : > { %693 = shalt.err (!%p690_p9)
}
  0x40   : > { %s694_s18 = scalar_lea.vmem %s951_s4, 512  ;;  %s800_s30 = smov [#allocation5]  }
  0x41   : > { %p695_p11 = scmp.ne.s32.totalorder %s951_s4, %s694_s18  ;;  %s699_s10 = sshll.u32 %s800_s30, 4  ;;  %s700_s10 = int_to_ptr.vmem [resolvable:$false] %s699_s10 }
  0x42   : > { %s701_s5 = scalar_lea.vmem %s700_s10, 1024  ;;  %p702_p8 = scmp.lt.s32.totalorder %s951_s4, %s700_s10 }
  0x43   : > { %p697_p5 = pnand %p695_p11, %p651_p2  ;;  %p703_p1 = scmp.lt.s32.totalorder %s701_s5, %s694_s18 }
  0x45   : > { %p698_p10 = pneg %p697_p5  ;;  %p704_p3 = por %p703_p1, %p702_p8 }
  0x47   : > { %p705_p4 = pnand %p704_p3, %p698_p10 }
  0x49   : > { %708 = shalt.err (!%p705_p4)
}
  0x4a   : > { %590 = dma.hbm_to_vmem [thread:$0]  (!%p901_p13), %s949_s29, 512, %s951_s4, %s197_s6, %s798_s7, %s798_s7, %s799_s11  }
  0x4b   : > { %229 = sbr.rel (%p942_p0) target bundleno = 327 (0x147), region = 32  ;;  %s985_s8 = sand.u32 (!%p942_p0), 1, %s779_s13  }
  0x4c   : > { %s539_s19 = sshll.u32 (!%p942_p0), %s985_s8, 4  ;;  %s232_s22 = scalar_lea.sflag (!%p942_p0), [#allocation3], %s985_s8 }
  0x4d   : > { %s235_s9 = scalar_lea.vmem (!%p942_p0), [#allocation2], %s539_s19  ;;  %p1075_p8 = scmp.ne.s32.totalorder (!%p942_p0), %s1069_s24, 0 }
  0x52   : > { %762 = dma.done.wait (%p1075_p8), %s232_s22, 256  }
  0x53   : > { %764 = vsyncadd (%p1075_p8), %s232_s22, 4294967040  ;;  %s540_s28 = sshll.u32 %s985_s8, 5  ;;  %s241_s7 = scalar_lea.sflag [#allocation6], %s985_s8 }
  0x54   : > { %s244_s11 = scalar_lea.vmem [#allocation5], %s540_s28 }
  0x55   : > { %766 = dma.done.wait (%p1075_p8), %s241_s7, 512  }
  0x56   : > { %768 = vsyncadd (%p1075_p8), %s241_s7, 4294966784  ;;  %vm299_vm0 = vcmask 261120   ;;  %v288_v0 = vld [vmem:[%s244_s11] sm:$0xff]  ;;  %v289_v1 = vld [vmem:[%s244_s11 + $0x8] sm:$0xff]  ;;  %p279_p13 = scmp.lt.s32.totalorder %s787_s15, 2  ;;  %s277_s6 = scalar_lea.vmem [#allocation7], %s539_s19 }
  0x57   : > { %v290_v2 = vld [vmem:[%s244_s11 + $0x10] sm:$0xff]  ;;  %v570_v3 = vpack.c.bf16 %v289_v1, %v288_v0  ;;  %v291_v4 = vld [vmem:[%s244_s11 + $0x18] sm:$0xff]  ;;  %s400_s23 = sshll.u32 %s277_s6, 4  ;;  %s552_s18 = sshll.u32 %s787_s15, 8  ;;  %s1007_s23 = int_to_ptr.vmem [resolvable:$true] %s400_s23 }
  0x58   : > { %v286_v5 = vld [vmem:[%s235_s9] sm:$0xff]  ;;  %v574_v6 = vpack.c.bf16 %v291_v4, %v290_v2  ;;  %v287_v7 = vld [vmem:[%s235_s9 + $0x8] sm:$0xff]  ;;  %s280_s24 = scalar_select %p279_p13, %s787_s15, 2 }
  0x59   : > { %567 = vmatprep.mubr.msk.f32.mxu0 %vm299_vm0, %v286_v5  ;;  %571 = vmatprep.subr.bf16.mxu0 %v570_v3  ;;  %s1012_s5 = scalar_lea.hbm %s1065_s3, %s552_s18  ;;  %s384_s19 = scalar_lea.sflag [#allocation4], %s985_s8 }
  0x5a   : > { %573 = vmatpush3.bf16.msra.mxu0 %v570_v3  ;;  %s284_s4 = scalar_lea.vmem %s1064_s2, %s280_s24  ;;  %s709_s15 = scalar_lea.vmem %s1007_s23, 256 }
  0x5b   : > { %575 = vmatprep.subr.bf16.mxu0 %v574_v6  ;;  %v542_v8 = vld [vmem:[%s284_s4] ss:$0 sm:$0xff]  ;;  %p710_p2 = scmp.ne.s32.totalorder %s1007_s23, %s709_s15  ;;  %p1076_p0 = scmp.ne.s32.totalorder %s1070_s25, 0 }
  0x5c   : > { %s801_s22 = smov [#allocation7]  }
  0x5d   : > { %p711_p12 = pnand %p710_p2, %p1076_p0  ;;  %s713_s9 = sshll.u32 %s801_s22, 4  ;;  %s714_s9 = int_to_ptr.vmem [resolvable:$false] %s713_s9 }
  0x5e   : > { %577 = vmatpush3.bf16.msra.mxu0 %v574_v6  ;;  %s715_s28 = scalar_lea.vmem %s714_s9, 512  ;;  %p716_p7 = scmp.lt.s32.totalorder %s1007_s23, %s714_s9 }
  0x5f   : > { %p712_p6 = pneg %p711_p12  ;;  %p717_p9 = scmp.lt.s32.totalorder %s715_s28, %s709_s15 }
  0x61   : > { %568 = vmatmul.mubr.msk.f32.vlgmr.msra.gmra.mrb[0].mxu0 %vm299_vm0, %v287_v7  ;;  %p718_p11 = por %p717_p9, %p716_p7 }
  0x63   : > { %p719_p5 = pnand %p718_p11, %p712_p6 }
 0x134   : > { %v569_v9 = vpop.f32.mrb[0].mxu0 }
 0x135   : > { %v378_v10 = vadd.f32 %v569_v9, %v542_v8  ;;  %v372_v11 = vpop.f32.mrb[1].mxu0 }
 0x136   : > { %v373_v12 = vadd.f32 %v542_v8, %v372_v11 }
 0x137   : > { %382 = vst.msk [vmem:[%s277_s6 + $0x8] sm:$0xff] %vm299_vm0, %v378_v10 }
 0x138   : > { %381 = vst.msk [vmem:[%s277_s6] sm:$0xff] %vm299_vm0, %v373_v12 }
 0x139   : > { %722 = shalt.err (!%p719_p5)
}
 0x13a   : > { %s723_s7 = scalar_lea.hbm %s1012_s5, 256  ;;  %s727_s21 = scalar_lea.hbm %s1065_s3, 768 }
 0x13b   : > { %p724_p10 = scmp.ne.s32.totalorder %s1012_s5, %s723_s7  ;;  %p728_p4 = scmp.lt.u32.totalorder %s1012_s5, %s1065_s3 }
 0x13c   : > { %p729_p8 = scmp.lt.u32.totalorder %s727_s21, %s723_s7  ;;  %p731_p2 = scmp.lt.u32.totalorder %s723_s7, %s1012_s5 }
 0x13d   : > { %p725_p1 = pnand %p724_p10, %p1076_p0 }
 0x13e   : > { %p730_p13 = por %p729_p8, %p728_p4 }
 0x13f   : > { %p726_p3 = pneg %p725_p1 }
 0x140   : > { %p732_p12 = por %p731_p2, %p730_p13 }
 0x142   : > { %p733_p6 = pnand %p732_p12, %p726_p3 }
 0x144   : > { %736 = shalt.err (!%p733_p6)
}
 0x145   : > { %s802_s6 = smov 128   ;;  %s803_s18 = smov 8  }
 0x146   : > { %582 = dma.vmem_to_hbm [thread:$0]  (%p1076_p0), %s1007_s23, 256, %s1012_s5, %s384_s19, %s802_s6, %s802_s6, %s803_s18  }
 0x147 PF: > { %p596_p7 = scmp.ge.s32.totalorder %s795_s17, 2  ;;  %s415_s30 = sand.u32 1, %s775_s12  }
 0x148   : > { %p1077_p9 = scmp.ne.s32.totalorder %s1071_s27, 0  ;;  %s416_s10 = scalar_lea.sflag [#allocation4], %s415_s30 }
 0x14a   : > { %p592_p11 = pnand %p596_p7, %p1077_p9 }
 0x14c   : > { %770 = dma.done.wait (!%p592_p11), %s416_s10, 256  }
 0x14d   : > { %772 = vsyncadd (!%p592_p11), %s416_s10, 4294967040  ;;  %s22_s17 = sadd.s32 1, %s795_s17   ;;  %s1078_s12 = smov %s779_s13 }
 0x14e   : > { %p19_p5 = scmp.ge.s32.totalorder %s22_s17, 5   ;;  %s1079_s13 = smov %s783_s14 }
 0x14f   : > { %s1080_s14 = smov %s880_s26  ;;  %s1081_s15 = smov %s791_s16 }
 0x150   : > { %s1082_s16 = smov %s1084_s20  ;;  %21 = sbr.rel (!%p19_p5) target bundleno = 8 (0x8), region = 93 }
 0x157   :  { %421 = vsyncpa [#allocation3], 1 }
 0x158   :  { %423 = vsyncpa [#allocation3 + $0x1], 1 }
 0x159   :  { %424 = vsyncpa [#allocation6], 1 }
 0x15a   :  { %426 = vsyncpa [#allocation6 + $0x1], 1 }
 0x15b   :  { %427 = vsyncpa [#allocation4], 1 }
 0x15c   :  { %429 = vsyncpa [#allocation4 + $0x1], 1 }

</bundles_post_ra>
